<compile_context>
chip_gen: v6e
topology: v6e:2x2x1
jax: 0.10.0
libtpu: 0.0.40
codegen_flags: <defaults>
</compile_context>

<pallas_src>
import math

import jax
import jax.numpy as jnp
from jax import lax
from jax.experimental import pallas as pl
from jax.experimental.pallas import tpu as pltpu

NODE_SIZE = 64                          # GraphNetConfig.node_size
HG_SIZE = NODE_SIZE * 2                 # hG_multiplier = 2 -> 128
NUM_CAT = 10                            # Surround_Node.number (synthetic)
NUM_INTERACTION = 6                     # Obj_Interaction.number (synthetic)
FEAT_SIZE = NUM_CAT + NUM_INTERACTION   # 16


def _round_up(x, m):
    return ((x + m - 1) // m) * m


def _initializer_kernel(n_ref,                    # SMEM scalar prefetch: [1] int32 true node count
                        h_ref,                    # [TN, 64]  bf16 node-vector tile
                        e_ref,                    # [B, 128]  bf16 lane-padded new-node features
                        w_agg_ref, b_agg_ref,     # [64, 256] bf16, [1, 256] f32  (f_m | g_m fused)
                        w_f_ref, b_f_ref,         # [256, 64] bf16, [1, 64] f32   (f_init fused)
                        out_ref,                  # [B, 64] f32
                        hg_ref):                  # VMEM scratch [1, 128] f32 accumulator
    i = pl.program_id(0)
    tn = h_ref.shape[0]

    @pl.when(i == 0)
    def _():
        hg_ref[...] = jnp.zeros_like(hg_ref)

    # Fused aggregator matmul: columns [0:128] = f_m, [128:256] = g_m (lane-128 aligned split).
    agg = (jnp.dot(h_ref[...], w_agg_ref[...],
                   preferred_element_type=jnp.float32) + b_agg_ref[...])      # [TN, 256] f32
    fm = agg[:, :HG_SIZE]
    gm = jax.nn.sigmoid(agg[:, HG_SIZE:])
    gated = fm * gm                                                           # [TN, 128] f32

    # Mask rows past the true node count (covers N % TN != 0 and the empty-graph case).
    row = lax.broadcasted_iota(jnp.int32, gated.shape, 0) + i * tn
    gated = jnp.where(row < n_ref[0], gated, 0.0)

    if tn >= 512:
        # Large tiles: the MXU has slack after the aggregator push -> reduce there.
        partial = jnp.dot(jnp.ones((1, tn), jnp.float32), gated,
                          preferred_element_type=jnp.float32)
    else:
        partial = jnp.sum(gated, axis=0, keepdims=True)                       # XLU reduce
    hg_ref[...] += partial                                                    # [1, 128]

    @pl.when(i == pl.num_programs(0) - 1)
    def _():
        b = e_ref.shape[0]
        h_g = jnp.broadcast_to(hg_ref[...].astype(jnp.bfloat16), (b, HG_SIZE))
        # Concat exactly at the 128-lane boundary -> no relayout; single K=256 MXU push.
        x = jnp.concatenate([e_ref[...], h_g], axis=1)                        # [B, 256] bf16
        hv = (jnp.dot(x, w_f_ref[...], preferred_element_type=jnp.float32)
              + b_f_ref[...])                                                 # [B, 64] f32
        out_ref[...] = jnp.tanh(hv)


def initializer_forward(node_vectors, e, params, *, tn_max=1024):
    """Batched Initializer.forward: one h_G over node_vectors, B new-node inits per call."""
    N = node_vectors.shape[0]
    B = e.shape[0]

    # Sublane-dense batch; lane-pad features 16 -> 128 (matching zero-padded weight rows).
    B_pad = max(_round_up(B, 8), 8)
    e_pad = jnp.zeros((B_pad, HG_SIZE), jnp.bfloat16)
    e_pad = e_pad.at[:B, :FEAT_SIZE].set(e.astype(jnp.bfloat16))

    # Node-axis tiling (bf16 -> keep TN a multiple of 16); N == 0 handled by the mask.
    TN = min(tn_max, max(_round_up(N, 16), 16))
    N_pad = max(_round_up(N, TN), TN)
    h_pad = jnp.zeros((N_pad, NODE_SIZE), jnp.bfloat16)
    if N > 0:
        h_pad = h_pad.at[:N].set(node_vectors.astype(jnp.bfloat16))
    n_arr = jnp.array([N], jnp.int32)

    grid = (N_pad // TN,)
    out = pl.pallas_call(
        _initializer_kernel,
        out_shape=jax.ShapeDtypeStruct((B_pad, NODE_SIZE), jnp.float32),
        grid_spec=pltpu.PrefetchScalarGridSpec(
            num_scalar_prefetch=1,
            grid=grid,
            in_specs=[
                pl.BlockSpec((TN, NODE_SIZE), lambda i, n: (i, 0)),          # node tiles
                pl.BlockSpec((B_pad, HG_SIZE), lambda i, n: (0, 0)),         # e (resident)
                pl.BlockSpec((NODE_SIZE, 2 * HG_SIZE), lambda i, n: (0, 0)),  # w_agg
                pl.BlockSpec((1, 2 * HG_SIZE), lambda i, n: (0, 0)),          # b_agg
                pl.BlockSpec((2 * HG_SIZE, NODE_SIZE), lambda i, n: (0, 0)),  # w_f fused
                pl.BlockSpec((1, NODE_SIZE), lambda i, n: (0, 0)),            # b_f
            ],
            out_specs=pl.BlockSpec((B_pad, NODE_SIZE), lambda i, n: (0, 0)),
            scratch_shapes=[pltpu.VMEM((1, HG_SIZE), jnp.float32)],
        ),
        compiler_params=pltpu.CompilerParams(
            dimension_semantics=("arbitrary",)),   # node axis is a reduction into hg_ref
    )(n_arr, h_pad, e_pad,
      params["w_agg"], params["b_agg"], params["w_f_fused"], params["b_f"])
    return out[:B]


# ---------------- pure-JAX f32 reference (for correctness check) ----------------
def initializer_ref(node_vectors, e, params):
    fm = node_vectors @ params["w_fm"] + params["b_fm"]
    gm = jax.nn.sigmoid(node_vectors @ params["w_gm"] + params["b_gm"])
    if node_vectors.shape[0] == 0:
        h_G = jnp.zeros((1, HG_SIZE), jnp.float32)
    else:
        h_G = (fm * gm).sum(axis=0, keepdims=True)                            # [1, 128]
    x = jnp.concatenate(
        [e, jnp.broadcast_to(h_G, (e.shape[0], HG_SIZE))], axis=1)            # [B, 144]
    return jnp.tanh(x @ params["w_f"] + params["b_f"])                        # [B, 64]


# ---------------- deterministic parameter init (PyTorch Linear-like uniform) ----------------
def init_params(key):
    D, HG, F = NODE_SIZE, HG_SIZE, FEAT_SIZE

    def lin(k, fan_in, fan_out):
        bound = 1.0 / math.sqrt(fan_in)
        kw, kb = jax.random.split(k)
        w = jax.random.uniform(kw, (fan_in, fan_out), jnp.float32, -bound, bound)
        b = jax.random.uniform(kb, (1, fan_out), jnp.float32, -bound, bound)
        return w, b

    k1, k2, k3 = jax.random.split(key, 3)
    w_fm, b_fm = lin(k1, D, HG)            # Aggregator.f_m
    w_gm, b_gm = lin(k2, D, HG)            # Aggregator.g_m (Linear inside Sequential+Sigmoid)
    w_f, b_f = lin(k3, F + HG, D)          # Initializer.f_init

    # Fused aggregator weight: columns [0:HG] = f_m, [HG:2HG] = g_m.
    w_agg = jnp.concatenate([w_fm, w_gm], axis=1).astype(jnp.bfloat16)        # [64, 256]
    b_agg = jnp.concatenate([b_fm, b_gm], axis=1)                             # [1, 256] f32
    # Fused f_init weight: e-part rows zero-padded 16 -> 128, then h_G-part.
    w_fe_pad = jnp.pad(w_f[:F], ((0, HG - F), (0, 0)))                        # [128, 64]
    w_f_fused = jnp.concatenate([w_fe_pad, w_f[F:]], axis=0).astype(jnp.bfloat16)  # [256, 64]

    return {
        "w_agg": w_agg, "b_agg": b_agg,
        "w_f_fused": w_f_fused, "b_f": b_f,
        # raw f32 pieces kept only for the pure-JAX reference
        "w_fm": w_fm, "b_fm": b_fm, "w_gm": w_gm, "b_gm": b_gm, "w_f": w_f,
    }


if __name__ == "__main__":
    key = jax.random.PRNGKey(0)
    k_p, k_h, k_e = jax.random.split(key, 3)

    N, B = 8, 8                                       # small graph, batched new-node inits
    params = init_params(k_p)
    node_vectors = jax.random.normal(k_h, (N, NODE_SIZE), jnp.float32)   # gn.node_vectors
    e = jax.random.normal(k_e, (B, FEAT_SIZE), jnp.float32)              # new-node features

    out = jax.block_until_ready(initializer_forward(node_vectors, e, params))
    ref = initializer_ref(node_vectors, e, params)
    assert out.shape == (B, NODE_SIZE)
    # bf16 MXU operands -> relaxed tolerance vs the f32 reference.
    assert jnp.allclose(out, ref, rtol=4e-2, atol=4e-2), (out, ref)

    # Empty-graph branch of the original module (h_G = zeros), handled by the row mask.
    empty = jnp.zeros((0, NODE_SIZE), jnp.float32)
    out0 = jax.block_until_ready(initializer_forward(empty, e, params))
    ref0 = initializer_ref(empty, e, params)
    assert jnp.allclose(out0, ref0, rtol=4e-2, atol=4e-2), (out0, ref0)

    print("KERNEL_OK")
</pallas_src>

<mosaic_0001>
module attributes {stable_mosaic.version = 11 : i64} {
  func.func @_initializer_kernel(%arg0: i32, %arg1: memref<1xi32, #tpu.memory_space<smem>>, %arg2: memref<16x64xbf16, #tpu.memory_space<vmem>>, %arg3: memref<8x128xbf16, #tpu.memory_space<vmem>>, %arg4: memref<64x256xbf16, #tpu.memory_space<vmem>>, %arg5: memref<1x256xf32, #tpu.memory_space<vmem>>, %arg6: memref<256x64xbf16, #tpu.memory_space<vmem>>, %arg7: memref<1x64xf32, #tpu.memory_space<vmem>>, %arg8: memref<8x64xf32, #tpu.memory_space<vmem>>, %arg9: memref<1x128xf32, #tpu.memory_space<vmem>>) attributes {dimension_semantics = [#tpu.dimension_semantics<arbitrary>], iteration_bounds = array<i64: 1>, scalar_prefetch = 1 : i64, scratch_operands = 1 : i64, tpu.core_type = #tpu.core_type<tc>, window_params = [{transform_indices = @transform_0, window_bounds = array<i64: 16, 64>}, {pipeline_mode = #tpu.pipeline_mode<synchronous>, transform_indices = @transform_1, window_bounds = array<i64: 8, 128>}, {pipeline_mode = #tpu.pipeline_mode<synchronous>, transform_indices = @transform_2, window_bounds = array<i64: 64, 256>}, {pipeline_mode = #tpu.pipeline_mode<synchronous>, transform_indices = @transform_3, window_bounds = array<i64: 1, 256>}, {pipeline_mode = #tpu.pipeline_mode<synchronous>, transform_indices = @transform_4, window_bounds = array<i64: 256, 64>}, {pipeline_mode = #tpu.pipeline_mode<synchronous>, transform_indices = @transform_5, window_bounds = array<i64: 1, 64>}, {pipeline_mode = #tpu.pipeline_mode<synchronous>, transform_indices = @transform_6, window_bounds = array<i64: 8, 64>}]} {
    %c0_i32 = arith.constant 0 : i32
    %0 = arith.cmpi eq, %arg0, %c0_i32 : i32
    %1 = arith.extui %0 : i1 to i32
    %c0_i32_0 = arith.constant 0 : i32
    %2 = arith.cmpi ne, %1, %c0_i32_0 : i32
    scf.if %2 {
      %cst_16 = arith.constant 0.000000e+00 : f32
      %34 = vector.broadcast %cst_16 : f32 to vector<1x128xf32>
      %c0_17 = arith.constant 0 : index
      %c0_18 = arith.constant 0 : index
      %35 = vector.load %arg9[%c0_17, %c0_18] : memref<1x128xf32, #tpu.memory_space<vmem>>, vector<1x128xf32>
      tpu.vector_store %arg9[%c0_17, %c0_18], %34 {strides = array<i32>} : memref<1x128xf32, #tpu.memory_space<vmem>>, vector<1x128xf32>,
    } else {
    }
    %c0 = arith.constant 0 : index
    %c0_1 = arith.constant 0 : index
    %3 = vector.load %arg2[%c0, %c0_1] : memref<16x64xbf16, #tpu.memory_space<vmem>>, vector<16x64xbf16>
    %c0_2 = arith.constant 0 : index
    %c0_3 = arith.constant 0 : index
    %4 = vector.load %arg4[%c0_2, %c0_3] : memref<64x256xbf16, #tpu.memory_space<vmem>>, vector<64x256xbf16>
    %cst = arith.constant dense<0.000000e+00> : vector<16x256xf32>
    %5 = tpu.matmul %3, %4, %cst {dimension_numbers = #tpu.dot_dimension_numbers<[1], [0], [0], [1], [0, 0, 1, 1], [], []>} : vector<16x64xbf16>, vector<64x256xbf16>, vector<16x256xf32> -> vector<16x256xf32>
    %c0_4 = arith.constant 0 : index
    %c0_5 = arith.constant 0 : index
    %6 = vector.load %arg5[%c0_4, %c0_5] : memref<1x256xf32, #tpu.memory_space<vmem>>, vector<1x256xf32>
    %7 = vector.broadcast %6 : vector<1x256xf32> to vector<16x256xf32>
    %8 = arith.addf %5, %7 : vector<16x256xf32>
    %9 = vector.extract_strided_slice %8 {offsets = [0, 0], sizes = [16, 128], strides = [1, 1]} : vector<16x256xf32> to vector<16x128xf32>
    %10 = vector.extract_strided_slice %8 {offsets = [0, 128], sizes = [16, 128], strides = [1, 1]} : vector<16x256xf32> to vector<16x128xf32>
    %11 = arith.negf %10 : vector<16x128xf32>
    %12 = math.exp %11 : vector<16x128xf32>
    %cst_6 = arith.constant 1.000000e+00 : f32
    %13 = vector.broadcast %cst_6 : f32 to vector<16x128xf32>
    %14 = arith.addf %13, %12 : vector<16x128xf32>
    %15 = arith.divf %13, %14 : vector<16x128xf32>
    %16 = arith.mulf %9, %15 : vector<16x128xf32>
    %17 = tpu.iota {dimensions = array<i32: 0>} : vector<16x128xi32>
    %c16_i32 = arith.constant 16 : i32
    %18 = arith.muli %arg0, %c16_i32 : i32
    %19 = vector.broadcast %18 : i32 to vector<16x128xi32>
    %20 = arith.addi %17, %19 : vector<16x128xi32>
    %c0_7 = arith.constant 0 : index
    %21 = memref.load %arg1[%c0_7] : memref<1xi32, #tpu.memory_space<smem>>
    %22 = vector.broadcast %21 : i32 to vector<16x128xi32>
    %23 = arith.cmpi slt, %20, %22 : vector<16x128xi32>
    %cst_8 = arith.constant 0.000000e+00 : f32
    %24 = vector.broadcast %cst_8 : f32 to vector<16x128xf32>
    %25 = arith.select %23, %16, %24 : vector<16x128xi1>, vector<16x128xf32>
    %cst_9 = arith.constant dense<0.000000e+00> : vector<128xf32>
    %26 = vector.multi_reduction <add>, %25, %cst_9 [0] : vector<16x128xf32> to vector<128xf32>
    %27 = vector.shape_cast %26 : vector<128xf32> to vector<1x128xf32>
    %c0_10 = arith.constant 0 : index
    %c0_11 = arith.constant 0 : index
    %28 = vector.load %arg9[%c0_10, %c0_11] : memref<1x128xf32, #tpu.memory_space<vmem>>, vector<1x128xf32>
    %29 = arith.addf %28, %27 : vector<1x128xf32>
    %c0_12 = arith.constant 0 : index
    %c0_13 = arith.constant 0 : index
    %30 = vector.load %arg9[%c0_12, %c0_13] : memref<1x128xf32, #tpu.memory_space<vmem>>, vector<1x128xf32>
    tpu.vector_store %arg9[%c0_12, %c0_13], %29 {strides = array<i32>} : memref<1x128xf32, #tpu.memory_space<vmem>>, vector<1x128xf32>,
    %c0_i32_14 = arith.constant 0 : i32
    %31 = arith.cmpi eq, %arg0, %c0_i32_14 : i32
    %32 = arith.extui %31 : i1 to i32
    %c0_i32_15 = arith.constant 0 : i32
    %33 = arith.cmpi ne, %32, %c0_i32_15 : i32
    scf.if %33 {
      %c0_16 = arith.constant 0 : index
      %c0_17 = arith.constant 0 : index
      %34 = vector.load %arg9[%c0_16, %c0_17] : memref<1x128xf32, #tpu.memory_space<vmem>>, vector<1x128xf32>
      %35 = arith.truncf %34 : vector<1x128xf32> to vector<1x128xbf16>
      %36 = vector.shape_cast %35 : vector<1x128xbf16> to vector<1x128xbf16>
      %37 = vector.broadcast %36 : vector<1x128xbf16> to vector<8x128xbf16>
      %c0_18 = arith.constant 0 : index
      %c0_19 = arith.constant 0 : index
      %38 = vector.load %arg3[%c0_18, %c0_19] : memref<8x128xbf16, #tpu.memory_space<vmem>>, vector<8x128xbf16>
      %39 = tpu.concatenate %38, %37 in 1 : vector<8x128xbf16>, vector<8x128xbf16> -> vector<8x256xbf16>
      %c0_20 = arith.constant 0 : index
      %c0_21 = arith.constant 0 : index
      %40 = vector.load %arg6[%c0_20, %c0_21] : memref<256x64xbf16, #tpu.memory_space<vmem>>, vector<256x64xbf16>
      %cst_22 = arith.constant dense<0.000000e+00> : vector<8x64xf32>
      %41 = tpu.matmul %39, %40, %cst_22 {dimension_numbers = #tpu.dot_dimension_numbers<[1], [0], [0], [1], [0, 0, 1, 1], [], []>} : vector<8x256xbf16>, vector<256x64xbf16>, vector<8x64xf32> -> vector<8x64xf32>
      %c0_23 = arith.constant 0 : index
      %c0_24 = arith.constant 0 : index
      %42 = vector.load %arg7[%c0_23, %c0_24] : memref<1x64xf32, #tpu.memory_space<vmem>>, vector<1x64xf32>
      %43 = vector.broadcast %42 : vector<1x64xf32> to vector<8x64xf32>
      %44 = arith.addf %41, %43 : vector<8x64xf32>
      %45 = math.tanh %44 : vector<8x64xf32>
      %c0_25 = arith.constant 0 : index
      %c0_26 = arith.constant 0 : index
      %46 = vector.load %arg8[%c0_25, %c0_26] : memref<8x64xf32, #tpu.memory_space<vmem>>, vector<8x64xf32>
      tpu.vector_store %arg8[%c0_25, %c0_26], %45 {strides = array<i32>} : memref<8x64xf32, #tpu.memory_space<vmem>>, vector<8x64xf32>,
    } else {
    }
    return
  }
  func.func @transform_0(%arg0: i32, %arg1: memref<1xi32, #tpu.memory_space<smem>>) -> (i32, i32) {
    %c0_i32 = arith.constant 0 : i32
    %c0_i32_0 = arith.constant 0 : i32
    return %arg0, %c0_i32 : i32, i32
  }
  func.func @transform_1(%arg0: i32, %arg1: memref<1xi32, #tpu.memory_space<smem>>) -> (i32, i32) {
    %c0_i32 = arith.constant 0 : i32
    %c0_i32_0 = arith.constant 0 : i32
    %c0_i32_1 = arith.constant 0 : i32
    return %c0_i32, %c0_i32_0 : i32, i32
  }
  func.func @transform_2(%arg0: i32, %arg1: memref<1xi32, #tpu.memory_space<smem>>) -> (i32, i32) {
    %c0_i32 = arith.constant 0 : i32
    %c0_i32_0 = arith.constant 0 : i32
    %c0_i32_1 = arith.constant 0 : i32
    return %c0_i32, %c0_i32_0 : i32, i32
  }
  func.func @transform_3(%arg0: i32, %arg1: memref<1xi32, #tpu.memory_space<smem>>) -> (i32, i32) {
    %c0_i32 = arith.constant 0 : i32
    %c0_i32_0 = arith.constant 0 : i32
    %c0_i32_1 = arith.constant 0 : i32
    return %c0_i32, %c0_i32_0 : i32, i32
  }
  func.func @transform_4(%arg0: i32, %arg1: memref<1xi32, #tpu.memory_space<smem>>) -> (i32, i32) {
    %c0_i32 = arith.constant 0 : i32
    %c0_i32_0 = arith.constant 0 : i32
    %c0_i32_1 = arith.constant 0 : i32
    return %c0_i32, %c0_i32_0 : i32, i32
  }
  func.func @transform_5(%arg0: i32, %arg1: memref<1xi32, #tpu.memory_space<smem>>) -> (i32, i32) {
    %c0_i32 = arith.constant 0 : i32
    %c0_i32_0 = arith.constant 0 : i32
    %c0_i32_1 = arith.constant 0 : i32
    return %c0_i32, %c0_i32_0 : i32, i32
  }
  func.func @transform_6(%arg0: i32, %arg1: memref<1xi32, #tpu.memory_space<smem>>) -> (i32, i32) {
    %c0_i32 = arith.constant 0 : i32
    %c0_i32_0 = arith.constant 0 : i32
    %c0_i32_1 = arith.constant 0 : i32
    return %c0_i32, %c0_i32_0 : i32, i32
  }
}

</mosaic_0001>

<bundles_post_ra>
// kernel: tpu_custom_call.1
= control target key start
LH: loop header
LB: loop body
LE: loop exit
PB: predicated region body
PF: predicated region fallthrough
CT: control target
= control target key end

     0   :  { %v502_v2 = vmov 0   ;;  %vm99_vm0 = vcmask 523264   ;;  %s637_s0 = inlined_call_operand.<no memory space> [shape: s32[1], index: 0, kind: input, shape index: {}]   ;;  %s638_s1 = inlined_call_operand.vmem [shape: bf16[16,64], index: 1, kind: input, shape index: {}]   ;;  %s639_s2 = inlined_call_operand.vmem [shape: bf16[8,128], index: 2, kind: input, shape index: {}]   ;;  %s640_s3 = inlined_call_operand.vmem [shape: bf16[64,256], index: 3, kind: input, shape index: {}]   ;;  %s641_s4 = inlined_call_operand.vmem [shape: f32[1,256], index: 4, kind: input, shape index: {}]   ;;  %s642_s5 = inlined_call_operand.vmem [shape: bf16[256,64], index: 5, kind: input, shape index: {}]   ;;  %s643_s6 = inlined_call_operand.vmem [shape: f32[1,64], index: 6, kind: input, shape index: {}]   ;;  %s644_s7 = inlined_call_operand.hbm [shape: f32[8,64], index: 7, kind: output, shape index: {}]  }
   0x1   :  { %v441_v0 = vld [vmem:[%s640_s3 + $0x34] ss:$8 sps:$4 sm:$0xff]   ;;  %v443_v1 = vld [vmem:[%s640_s3 + $0x30] ss:$8 sps:$4 sm:$0xff]   ;;  %135 = vmatprep.mubr.bf16.mxu0 %v502_v2  ;;  %v444_v3 = vld [vmem:[%s640_s3 + $0x24] ss:$8 sps:$4 sm:$0xff]  }
   0x2   :  { %111 = vmatprep.subr.bf16.mxu0 %v441_v0  ;;  %v446_v4 = vld [vmem:[%s640_s3 + $0x20] ss:$8 sps:$4 sm:$0xff]   ;;  %v447_v5 = vld [vmem:[%s640_s3 + $0x14] ss:$8 sps:$4 sm:$0xff]   ;;  %v449_v6 = vld [vmem:[%s640_s3 + $0x10] ss:$8 sps:$4 sm:$0xff]  }
   0x3   :  { %112 = vmatpush1.bf16.msra.mxu0 %v443_v1  ;;  %v450_v7 = vld [vmem:[%s640_s3 + $0x4] ss:$8 sps:$4 sm:$0xff]   ;;  %v452_v8 = vld [vmem:[%s640_s3] ss:$8 sps:$4 sm:$0xff]  }
   0x4   :  { %113 = vmatprep.subr.bf16.mxu0 %v444_v3  ;;  %v453_v9 = vld [vmem:[%s638_s1] sm:$0xff]  }
   0x7   :  { %114 = vmatpush1.bf16.msra.mxu0 %v446_v4 }
   0x8   :  { %115 = vmatprep.subr.bf16.mxu0 %v447_v5 }
   0xb   :  { %116 = vmatpush1.bf16.msra.mxu0 %v449_v6 }
   0xc   :  { %117 = vmatprep.subr.bf16.mxu0 %v450_v7 }
   0xf   :  { %118 = vmatpush1.bf16.msra.mxu0 %v452_v8 }
  0x10   :  { %13 = vsyncpa [#allocation6], 0  ;;  %v503_v10 = vmov 0.0   ;;  %v454_v11 = vld [vmem:[%s642_s5 + $0x78] sm:$0xff]   ;;  %v456_v13 = vld [vmem:[%s642_s5 + $0x70] sm:$0xff]   ;;  %v44_v27 = vlaneseq  ;;  %v168_v49 = vstv %s637_s0  ;;  %s504_s29 = smov [#allocation5]  }
  0x11   :  { %31 = vst [vmem:[#allocation2] sm:$0x1] %v503_v10  ;;  %v455_v12 = vld [vmem:[%s642_s5 + $0x38] sm:$0xff]   ;;  %416 = vmatprep.subr.bf16.mxu1 %v454_v11  ;;  %v457_v14 = vld [vmem:[%s642_s5 + $0x30] sm:$0xff]   ;;  %v458_v15 = vld [vmem:[%s642_s5 + $0x68] sm:$0xff]   ;;  %s379_s30 = sshll.u32 %s504_s29, 4  ;;  %s380_s30 = int_to_ptr.vmem [resolvable:$true] %s379_s30 }
  0x12   :  { %396 = vmatmul.mubr.msk.bf16.vlgmr.msra.gmra.mxu0 %vm99_vm0, %v453_v9  ;;  %417 = vmatpush3.bf16.msra.mxu1 %v455_v12  ;;  %v459_v16 = vld [vmem:[%s642_s5 + $0x28] sm:$0xff]   ;;  %v460_v17 = vld [vmem:[%s642_s5 + $0x60] sm:$0xff]   ;;  %v462_v19 = vld [vmem:[%s642_s5 + $0x58] sm:$0xff]   ;;  %v45_v28 = vshrl.u32 %v44_v27, 7  ;;  %p485_p1 = scmp.lt.s32.totalorder %s380_s30, %s380_s30 }
  0x13   :  { %418 = vmatprep.subr.bf16.mxu1 %v456_v13  ;;  %v461_v18 = vld [vmem:[%s642_s5 + $0x20] sm:$0xff]   ;;  %v463_v20 = vld [vmem:[%s642_s5 + $0x18] sm:$0xff]   ;;  %v464_v21 = vld [vmem:[%s642_s5 + $0x50] sm:$0xff]  }
  0x14   :  { %v465_v22 = vld [vmem:[%s642_s5 + $0x10] sm:$0xff]   ;;  %v466_v23 = vld [vmem:[%s642_s5 + $0x48] sm:$0xff]   ;;  %v468_v25 = vld [vmem:[%s642_s5 + $0x40] sm:$0xff]   ;;  %v50_v29 = vsub.s32 1, %v45_v28  ;;  %v46_v44 = vsub.s32 0, %v45_v28  ;;  %v162_v47 = vadd.s32 8, %v45_v28  ;;  %vm169_vm1 = vcmp.lt.s32.totalorder %v45_v28, %v168_v49 }
  0x15   :  { %v467_v24 = vld [vmem:[%s642_s5 + $0x8] sm:$0xff]   ;;  %v469_v26 = vld [vmem:[%s642_s5] sm:$0xff]  }
  0x16   :  { %419 = vmatpush3.bf16.msra.mxu1 %v457_v14  ;;  %v42_v30 = vld [vmem:[%s641_s4] sm:$0x3]  ;;  %vm170_vm2 = vcmp.lt.s32.totalorder %v162_v47, %v168_v49 }
  0x17   :  { %420 = vmatprep.subr.bf16.mxu1 %v458_v15  ;;  %v51_v31 = vrot.slane %v42_v30, %v50_v29  ;;  %v47_v45 = vrot.slane %v42_v30, %v46_v44  ;;  %v195_v5 = vld [vmem:[%s639_s2] sm:$0xf]  ;;  %s480_s2 = scalar_lea.vmem %s380_s30, 128 }
  0x18   :  { %v180_v62 = vld [vmem:[#allocation2] sm:$0x1]  ;;  %p481_p0 = scmp.ne.s32.totalorder %s380_s30, %s480_s2  ;;  %p486_p2 = scmp.lt.s32.totalorder %s480_s2, %s480_s2 }
  0x19   :  { %v399_v7 = vld [vmem:[%s643_s6] ss:$0 sm:$0xff] }
  0x1a   :  { %421 = vmatpush3.bf16.msra.mxu1 %v459_v16  ;;  %p487_p3 = por %p486_p2, %p485_p1 }
  0x1b   :  { %422 = vmatprep.subr.bf16.mxu1 %v460_v17 }
  0x1c   :  { %p488_p4 = pnand %p487_p3, %p481_p0 }
  0x1e   :  { %423 = vmatpush3.bf16.msra.mxu1 %v461_v18 }
  0x1f   :  { %424 = vmatprep.subr.bf16.mxu1 %v462_v19 }
  0x22   :  { %425 = vmatpush3.bf16.msra.mxu1 %v463_v20 }
  0x23   :  { %426 = vmatprep.subr.bf16.mxu1 %v464_v21 }
  0x26   :  { %427 = vmatpush3.bf16.msra.mxu1 %v465_v22 }
  0x27   :  { %428 = vmatprep.subr.bf16.mxu1 %v466_v23 }
  0x2a   :  { %429 = vmatpush3.bf16.msra.mxu1 %v467_v24 }
  0x2b   :  { %430 = vmatprep.subr.bf16.mxu1 %v468_v25 }
  0x2e   :  { %431 = vmatpush3.bf16.msra.mxu1 %v469_v26 }
  0xd2   :  { %v137_v32 = vpop.f32.mrf.mxu0 }
  0xd3   :  { %v138_v48 = vadd.f32 %v137_v32, %v47_v45 }
  0xd4   :  { %v139_v33 = vpop.f32.mrf.mxu0 }
  0xd5   :  { %v140_v34 = vadd.f32 %v139_v33, %v51_v31 }
  0xd6   :  { %v141_v35 = vpop.f32.mrf.mxu0 }
  0xd7   :  { %v397_v36 = vmul.f32 -1.442695, %v140_v34  ;;  %v142_v51 = vadd.f32 %v141_v35, %v47_v45 }
  0xd8   :  { %v143_v37 = vpop.f32.mrf.mxu0 }
  0xd9   :  { %470 = vpow2.f32 %v397_v36  ;;  %v144_v38 = vadd.f32 %v143_v37, %v51_v31 }
  0xdb   :  { %v398_v39 = vmul.f32 -1.442695, %v144_v38 }
  0xdd   :  { %472 = vpow2.f32 %v398_v39 }
  0xe6   :  { %v471_v40 = vpop.eup %470 }
  0xe7   :  { %v152_v41 = vadd.f32 1.0, %v471_v40 }
  0xe9   :  { %474 = vrcp.f32 %v152_v41 }
  0xea   :  { %v473_v42 = vpop.eup %472 }
  0xeb   :  { %v153_v43 = vadd.f32 1.0, %v473_v42 }
  0xed   :  { %476 = vrcp.f32 %v153_v43 }
  0xf6   :  { %v475_v46 = vpop.eup %474 }
  0xf7   :  { %v158_v50 = vmul.f32 %v475_v46, %v138_v48 }
  0xf9   :  { %v171_v54 = vsel %vm169_vm1, %v158_v50, 0.0 }
  0xfa   :  { %v477_v52 = vpop.eup %476 }
  0xfb   :  { %v159_v53 = vmul.f32 %v477_v52, %v142_v51 }
  0xfd   :  { %v172_v55 = vsel %vm170_vm2, %v159_v53, 0.0 }
  0xfe   :  { %v173_v56 = vadd.f32 %v172_v55, %v171_v54 }
 0x100   :  { %v174_v57 = vrot.slane %v173_v56, 4 }
 0x102   :  { %v175_v58 = vadd.f32 %v174_v57, %v173_v56 }
 0x104   :  { %v176_v59 = vrot.slane %v175_v58, 2 }
 0x106   :  { %v177_v60 = vadd.f32 %v176_v59, %v175_v58 }
 0x108   :  { %v178_v61 = vrot.slane %v177_v60, 1 }
 0x10a   :  { %v179_v63 = vadd.f32 %v178_v61, %v177_v60 }
 0x10c   :  { %v181_v0 = vadd.f32 %v180_v62, %v179_v63 }
 0x10e   :  { %182 = vst [vmem:[#allocation2] sm:$0x1] %v181_v0 }
 0x115   :  { %v186_v1 = vld [vmem:[#allocation2] sm:$0x1] }
 0x116   :  { %v187_v2 = vpack.c.bf16 %v186_v1, %v186_v1 }
 0x118   :  { %v189_v3 = vpack.i.b16 %v187_v2, %v187_v2 }
 0x11a   :  { %v194_v4 = vrot.slane %v189_v3, %v46_v44 }
 0x11c   :  { %363 = vmatprep.mubr.bf16.mxu1 %v194_v4 }
 0x11d   :  { %364 = vmatmul.mubr.bf16.vlgmr.msra.gmra.mxu1 %v195_v5 }
 0x1dd   :  { %v432_v6 = vpop.f32.mrf.mxu1 }
 0x1df   :  { %v433_v8 = vpop.f32.mrf.mxu1 }
 0x1e0   :  { %v434_v9 = vadd.f32 %v433_v8, %v432_v6 }
 0x1e1   :  { %v435_v10 = vpop.f32.mrf.mxu1 }
 0x1e2   :  { %v366_v11 = vadd.f32 %v434_v9, %v399_v7 }
 0x1e3   :  { %v436_v12 = vpop.f32.mrf.mxu1 }
 0x1e4   :  { %478 = vtanh.f32 %v366_v11 }
 0x1f1   :  { %v479_v13 = vpop.eup %478 }
 0x1f2   :  { %372 = vst.msk [vmem:[#allocation5] sm:$0xff] %vm99_vm0, %v479_v13 }
 0x1f3   :  { %491 = shalt.err (!%p488_p4)
}
 0x1f4   :  { %382 = dma.vmem_to_hbm [thread:$0]  %s380_s30, 128, %s644_s7, [#allocation6]  }
 0x1f5   :  { %500 = dma.done.wait [#allocation6], 128  }
 0x1f6   :  { %501 = vsyncadd [#allocation6], 4294967168 }
 0x1f7   :  { %386 = vsyncpa [#allocation6], 1 }

</bundles_post_ra>
